<compile_context>
chip_gen: v6e
topology: v6e:2x2x1
jax: 0.10.0
libtpu: 0.0.40
codegen_flags: <defaults>
</compile_context>

<pallas_src>
import functools

import jax
import jax.numpy as jnp
from jax import lax
from jax.experimental import pallas as pl
from jax.experimental.pallas import tpu as pltpu

_LANES = 128
_VMEM_LIMIT = 32 * 1024 * 1024  # safe on v5e/v6e (128 MiB phys) and v7x (64 MiB phys)


def _dice_slab_kernel(x_ref, t_ref, inter_ref, union_ref, *, rows, tile_rows):
    """Primary path. x_ref/t_ref: (1, tile_rows, 128); outputs: (1, 1, 128)."""
    r = pl.program_id(1)

    @pl.when(r == 0)
    def _():
        inter_ref[...] = jnp.zeros_like(inter_ref)
        union_ref[...] = jnp.zeros_like(union_ref)

    x = x_ref[...].astype(jnp.float32)
    t = t_ref[...].astype(jnp.float32)

    if rows % tile_rows:  # static check: mask garbage rows of the ragged last tile
        row = r * tile_rows + lax.broadcasted_iota(jnp.int32, x.shape, 1)
        valid = row < rows
        x = jnp.where(valid, x, 0.0)
        t = jnp.where(valid, t, 0.0)

    # Lane-dense partial sums: reduce only over the sublane (row) axis here; the
    # expensive cross-lane reduction happens exactly once, outside the kernel.
    inter_ref[...] += jnp.sum(x * t, axis=1, keepdims=True)
    union_ref[...] += jnp.sum(x + t, axis=1, keepdims=True)


def _dice_flat_kernel(x_ref, t_ref, inter_ref, union_ref, *, feat, tile_feat):
    """Fallback path. x_ref/t_ref: (N, tile_feat); outputs: (N, 1)."""
    k = pl.program_id(0)

    @pl.when(k == 0)
    def _():
        inter_ref[...] = jnp.zeros_like(inter_ref)
        union_ref[...] = jnp.zeros_like(union_ref)

    x = x_ref[...].astype(jnp.float32)
    t = t_ref[...].astype(jnp.float32)

    if feat % tile_feat:  # static check: mask garbage lanes of the ragged last tile
        col = k * tile_feat + lax.broadcasted_iota(jnp.int32, x.shape, 1)
        valid = col < feat
        x = jnp.where(valid, x, 0.0)
        t = jnp.where(valid, t, 0.0)

    inter_ref[...] += jnp.sum(x * t, axis=-1, keepdims=True)
    union_ref[...] += jnp.sum(x + t, axis=-1, keepdims=True)


def binary_dice_loss(inputs, targets, *, vmem_block_bytes=2 * 1024 * 1024):
    """Binary dice loss; inputs/targets: any shape with leading batch dim N."""
    N = targets.shape[0]
    x = inputs.reshape(N, -1)
    t = targets.reshape(N, -1)
    D = x.shape[1]
    itemsize = max(x.dtype.itemsize, t.dtype.itemsize)
    smooth = 1.0

    if D % _LANES == 0:
        # ---- primary: per-sample (R, 128) slab, parallel batch axis ----
        R = D // _LANES
        x3 = x.reshape(N, R, _LANES)
        t3 = t.reshape(N, R, _LANES)
        rt_max = max(8, (vmem_block_bytes // (_LANES * itemsize)) // 8 * 8)
        rt = R if R <= rt_max else rt_max  # full dim or a multiple of 8
        n_r = pl.cdiv(R, rt)
        kernel = functools.partial(_dice_slab_kernel, rows=R, tile_rows=rt)
        out_i, out_u = pl.pallas_call(
            kernel,
            out_shape=(
                jax.ShapeDtypeStruct((N, 1, _LANES), jnp.float32),
                jax.ShapeDtypeStruct((N, 1, _LANES), jnp.float32),
            ),
            grid_spec=pltpu.PrefetchScalarGridSpec(
                num_scalar_prefetch=0,
                grid=(N, n_r),
                in_specs=[
                    pl.BlockSpec((1, rt, _LANES), lambda n, r: (n, r, 0)),
                    pl.BlockSpec((1, rt, _LANES), lambda n, r: (n, r, 0)),
                ],
                out_specs=(
                    pl.BlockSpec((1, 1, _LANES), lambda n, r: (n, 0, 0)),
                    pl.BlockSpec((1, 1, _LANES), lambda n, r: (n, 0, 0)),
                ),
            ),
            compiler_params=pltpu.CompilerParams(
                dimension_semantics=("parallel", "arbitrary"),
                vmem_limit_bytes=_VMEM_LIMIT,
            ),
        )(x3, t3)
        inter = jnp.sum(out_i, axis=(1, 2))
        union = jnp.sum(out_u, axis=(1, 2))
    else:
        # ---- fallback: flat (N, D) streaming reduction (no padding pass) ----
        td_max = max(_LANES, (vmem_block_bytes // (N * itemsize)) // _LANES * _LANES)
        td = D if D <= td_max else td_max  # full dim or a multiple of 128
        kernel = functools.partial(_dice_flat_kernel, feat=D, tile_feat=td)
        out_i, out_u = pl.pallas_call(
            kernel,
            out_shape=(
                jax.ShapeDtypeStruct((N, 1), jnp.float32),
                jax.ShapeDtypeStruct((N, 1), jnp.float32),
            ),
            grid_spec=pltpu.PrefetchScalarGridSpec(
                num_scalar_prefetch=0,
                grid=(pl.cdiv(D, td),),
                in_specs=[
                    pl.BlockSpec((N, td), lambda k: (0, k)),
                    pl.BlockSpec((N, td), lambda k: (0, k)),
                ],
                out_specs=(
                    pl.BlockSpec((N, 1), lambda k: (0, 0)),
                    pl.BlockSpec((N, 1), lambda k: (0, 0)),
                ),
            ),
            compiler_params=pltpu.CompilerParams(
                dimension_semantics=("arbitrary",),
                vmem_limit_bytes=_VMEM_LIMIT,
            ),
        )(x, t)
        inter = out_i[:, 0]
        union = out_u[:, 0]

    dice = (2.0 * inter + smooth) / (union + smooth)
    return 1.0 - jnp.sum(dice) / N


def _reference(inputs, targets):
    N = targets.shape[0]
    smooth = 1.0
    xf = inputs.reshape(N, -1).astype(jnp.float32)
    tf = targets.reshape(N, -1).astype(jnp.float32)
    inter = (xf * tf).sum(1)
    dice = (2.0 * inter + smooth) / (xf.sum(1) + tf.sum(1) + smooth)
    return 1.0 - dice.sum() / N


if __name__ == "__main__":
    root = jax.random.PRNGKey(0)

    def run_case(i, shape, dtype=jnp.float32, **kw):
        k1, k2 = jax.random.split(jax.random.fold_in(root, i))
        x = jax.nn.sigmoid(jax.random.normal(k1, shape)).astype(dtype)
        t = (jax.random.uniform(k2, shape) > 0.5).astype(jnp.float32)
        loss = jax.block_until_ready(binary_dice_loss(x, t, **kw))
        ref = _reference(x, t)
        assert jnp.allclose(loss, ref, atol=1e-4, rtol=1e-4), (shape, loss, ref)

    run_case(0, (2, 4, 16, 16))                          # slab path, single row-tile
    run_case(1, (2, 4, 32, 32), vmem_block_bytes=8192)   # slab path, multi-tile accumulation
    run_case(2, (2, 4, 16, 16), dtype=jnp.bfloat16)      # narrow-dtype streaming, f32 accumulate
    run_case(3, (2, 3, 5, 5))                            # flat fallback (D not multiple of 128)
    print("KERNEL_OK")
</pallas_src>

<mosaic_0001>
module attributes {stable_mosaic.version = 11 : i64} {
  func.func @_dice_slab_kernel(%arg0: i32, %arg1: i32, %arg2: memref<1x8x128xf32, #tpu.memory_space<vmem>>, %arg3: memref<1x8x128xf32, #tpu.memory_space<vmem>>, %arg4: memref<1x1x128xf32, #tpu.memory_space<vmem>>, %arg5: memref<1x1x128xf32, #tpu.memory_space<vmem>>) attributes {dimension_semantics = [#tpu.dimension_semantics<parallel>, #tpu.dimension_semantics<arbitrary>], iteration_bounds = array<i64: 2, 1>, scalar_prefetch = 0 : i64, scratch_operands = 0 : i64, tpu.core_type = #tpu.core_type<tc>, window_params = [{transform_indices = @transform_0, window_bounds = array<i64: 1, 8, 128>}, {transform_indices = @transform_1, window_bounds = array<i64: 1, 8, 128>}, {transform_indices = @transform_2, window_bounds = array<i64: 1, 1, 128>}, {transform_indices = @transform_3, window_bounds = array<i64: 1, 1, 128>}]} {
    %c0_i32 = arith.constant 0 : i32
    %0 = arith.cmpi eq, %arg1, %c0_i32 : i32
    %1 = arith.extui %0 : i1 to i32
    %c0_i32_0 = arith.constant 0 : i32
    %2 = arith.cmpi ne, %1, %c0_i32_0 : i32
    scf.if %2 {
      %cst_19 = arith.constant 0.000000e+00 : f32
      %17 = vector.broadcast %cst_19 : f32 to vector<1x1x128xf32>
      %c0_20 = arith.constant 0 : index
      %c0_21 = arith.constant 0 : index
      %c0_22 = arith.constant 0 : index
      %18 = vector.load %arg4[%c0_20, %c0_21, %c0_22] : memref<1x1x128xf32, #tpu.memory_space<vmem>>, vector<1x1x128xf32>
      tpu.vector_store %arg4[%c0_20, %c0_21, %c0_22], %17 {strides = array<i32>} : memref<1x1x128xf32, #tpu.memory_space<vmem>>, vector<1x1x128xf32>,
      %cst_23 = arith.constant 0.000000e+00 : f32
      %19 = vector.broadcast %cst_23 : f32 to vector<1x1x128xf32>
      %c0_24 = arith.constant 0 : index
      %c0_25 = arith.constant 0 : index
      %c0_26 = arith.constant 0 : index
      %20 = vector.load %arg5[%c0_24, %c0_25, %c0_26] : memref<1x1x128xf32, #tpu.memory_space<vmem>>, vector<1x1x128xf32>
      tpu.vector_store %arg5[%c0_24, %c0_25, %c0_26], %19 {strides = array<i32>} : memref<1x1x128xf32, #tpu.memory_space<vmem>>, vector<1x1x128xf32>,
    } else {
    }
    %c0 = arith.constant 0 : index
    %c0_1 = arith.constant 0 : index
    %c0_2 = arith.constant 0 : index
    %3 = vector.load %arg2[%c0, %c0_1, %c0_2] : memref<1x8x128xf32, #tpu.memory_space<vmem>>, vector<1x8x128xf32>
    %c0_3 = arith.constant 0 : index
    %c0_4 = arith.constant 0 : index
    %c0_5 = arith.constant 0 : index
    %4 = vector.load %arg3[%c0_3, %c0_4, %c0_5] : memref<1x8x128xf32, #tpu.memory_space<vmem>>, vector<1x8x128xf32>
    %c0_6 = arith.constant 0 : index
    %c0_7 = arith.constant 0 : index
    %c0_8 = arith.constant 0 : index
    %5 = vector.load %arg4[%c0_6, %c0_7, %c0_8] : memref<1x1x128xf32, #tpu.memory_space<vmem>>, vector<1x1x128xf32>
    %6 = arith.mulf %3, %4 : vector<1x8x128xf32>
    %cst = arith.constant dense<0.000000e+00> : vector<1x128xf32>
    %7 = vector.multi_reduction <add>, %6, %cst [1] : vector<1x8x128xf32> to vector<1x128xf32>
    %8 = vector.shape_cast %7 : vector<1x128xf32> to vector<1x1x128xf32>
    %9 = arith.addf %5, %8 : vector<1x1x128xf32>
    %c0_9 = arith.constant 0 : index
    %c0_10 = arith.constant 0 : index
    %c0_11 = arith.constant 0 : index
    %10 = vector.load %arg4[%c0_9, %c0_10, %c0_11] : memref<1x1x128xf32, #tpu.memory_space<vmem>>, vector<1x1x128xf32>
    tpu.vector_store %arg4[%c0_9, %c0_10, %c0_11], %9 {strides = array<i32>} : memref<1x1x128xf32, #tpu.memory_space<vmem>>, vector<1x1x128xf32>,
    %c0_12 = arith.constant 0 : index
    %c0_13 = arith.constant 0 : index
    %c0_14 = arith.constant 0 : index
    %11 = vector.load %arg5[%c0_12, %c0_13, %c0_14] : memref<1x1x128xf32, #tpu.memory_space<vmem>>, vector<1x1x128xf32>
    %12 = arith.addf %3, %4 : vector<1x8x128xf32>
    %cst_15 = arith.constant dense<0.000000e+00> : vector<1x128xf32>
    %13 = vector.multi_reduction <add>, %12, %cst_15 [1] : vector<1x8x128xf32> to vector<1x128xf32>
    %14 = vector.shape_cast %13 : vector<1x128xf32> to vector<1x1x128xf32>
    %15 = arith.addf %11, %14 : vector<1x1x128xf32>
    %c0_16 = arith.constant 0 : index
    %c0_17 = arith.constant 0 : index
    %c0_18 = arith.constant 0 : index
    %16 = vector.load %arg5[%c0_16, %c0_17, %c0_18] : memref<1x1x128xf32, #tpu.memory_space<vmem>>, vector<1x1x128xf32>
    tpu.vector_store %arg5[%c0_16, %c0_17, %c0_18], %15 {strides = array<i32>} : memref<1x1x128xf32, #tpu.memory_space<vmem>>, vector<1x1x128xf32>,
    return
  }
  func.func @transform_0(%arg0: i32, %arg1: i32) -> (i32, i32, i32) {
    %c0_i32 = arith.constant 0 : i32
    %c0_i32_0 = arith.constant 0 : i32
    return %arg0, %arg1, %c0_i32 : i32, i32, i32
  }
  func.func @transform_1(%arg0: i32, %arg1: i32) -> (i32, i32, i32) {
    %c0_i32 = arith.constant 0 : i32
    %c0_i32_0 = arith.constant 0 : i32
    return %arg0, %arg1, %c0_i32 : i32, i32, i32
  }
  func.func @transform_2(%arg0: i32, %arg1: i32) -> (i32, i32, i32) {
    %c0_i32 = arith.constant 0 : i32
    %c0_i32_0 = arith.constant 0 : i32
    %c0_i32_1 = arith.constant 0 : i32
    return %arg0, %c0_i32, %c0_i32_0 : i32, i32, i32
  }
  func.func @transform_3(%arg0: i32, %arg1: i32) -> (i32, i32, i32) {
    %c0_i32 = arith.constant 0 : i32
    %c0_i32_0 = arith.constant 0 : i32
    %c0_i32_1 = arith.constant 0 : i32
    return %arg0, %c0_i32, %c0_i32_0 : i32, i32, i32
  }
}

</mosaic_0001>

<bundles_post_ra>
// kernel: tpu_custom_call.1
= control target key start
LH: loop header
LB: loop body
LE: loop exit
PB: predicated region body
PF: predicated region fallthrough
CT: control target
= control target key end

     0   :  { %9 = vsyncpa [#allocation3], 0  ;;  %s935_s0 = inlined_call_operand.hbm [shape: f32[2,8,128], index: 0, kind: input, shape index: {}]   ;;  %s936_s1 = inlined_call_operand.hbm [shape: f32[2,8,128], index: 1, kind: input, shape index: {}]   ;;  %s937_s2 = inlined_call_operand.hbm [shape: f32[2,1,128], index: 2, kind: output, shape index: {0}]   ;;  %s938_s3 = inlined_call_operand.hbm [shape: f32[2,1,128], index: 3, kind: output, shape index: {1}]  }
   0x1   :  { %11 = vsyncpa [#allocation3 + $0x1], 0 }
   0x2   :  { %12 = vsyncpa [#allocation6], 0 }
   0x3   :  { %14 = vsyncpa [#allocation6 + $0x1], 0 }
   0x4   :  { %15 = vsyncpa [#allocation4], 0 }
   0x5   :  { %17 = vsyncpa [#allocation4 + $0x1], 0 }
   0x6   :  { %18 = vsyncpa [#allocation9], 0 }
   0x7   :  { %20 = vsyncpa [#allocation9 + $0x1], 0  ;;  %s720_s12 = smov 0   ;;  %s722_s13 = smov 0  }
   0x8   :  { %s724_s14 = smov 0   ;;  %s726_s15 = smov 0  }
   0x9   :  { %s728_s16 = smov 0   ;;  %s730_s17 = smov 0  }
   0xa LB: > { %s435_s18 = sadd.s32 4294967295, %s693_s17   ;;  %s436_s19 = sadd.s32 4294967294, %s693_s17   ;;  %s693_s17 = sphi %s730_s17, %s26_s17   ;;  %s689_s16 = sphi %s728_s16, %s950_s16   ;;  %s685_s15 = sphi %s726_s15, %s949_s15   ;;  %s681_s14 = sphi %s724_s14, %s948_s14   ;;  %s677_s13 = sphi %s722_s13, %s947_s13   ;;  %s673_s12 = sphi %s720_s12, %s946_s12  }
   0xb   : > { %s38_s20 = sadd.s32 1, %s689_s16  ;;  %s47_s21 = sadd.s32 1, %s681_s14 }
   0xc   : > { %p40_p0 = scmp.ge.s32.totalorder %s38_s20, 2  ;;  %p54_p1 = scmp.ne.s32.totalorder %s681_s14, %s677_s13 }
   0xd   : > { %p55_p2 = scmp.eq.s32.totalorder %s693_s17, 0  ;;  %p60_p3 = scmp.ne.s32.totalorder %s677_s13, %s673_s12 }
   0xe   : > { %s952_s20 = smov (%p40_p0, %s38_s20), 0  ;;  %p61_p5 = scmp.eq.s32.totalorder %s435_s18, 0 }
   0xf   : > { %p761_p4 = por %p55_p2, %p54_p1  ;;  %s42_s23 = ssub.s32 %s689_s16, %s952_s20 }
  0x10   : > { %p112_p6 = scmp.eq.s32.totalorder %s435_s18, 1  ;;  %p45_p7 = scmp.eq.s32.totalorder %s42_s23, 0 }
  0x11   : > { %p767_p8 = por %p61_p5, %p60_p3  ;;  %p118_p10 = scmp.eq.s32.totalorder %s436_s19, 1 }
  0x12   : > { %p771_p9 = por %p112_p6, %p54_p1  ;;  %p472_p13 = scmp.lt.s32.totalorder %s693_s17, 2 }
  0x13   : > { %s776_s26 = scalar_select %p45_p7, %s681_s14, %s47_s21  }
  0x14   : > { %p778_p11 = por %p118_p10, %p60_p3  ;;  %s785_s28 = sand.u32 1, %s681_s14  }
  0x15   : > { %s439_s29 = sshll.u32 %s785_s28, 3  ;;  %s440_s30 = sshll.u32 %s689_s16, 7 }
  0x16   : > { %s174_s6 = scalar_lea.hbm %s935_s0, %s440_s30  ;;  %s168_s7 = scalar_lea.vmem [#allocation2], %s439_s29 }
  0x17   : > { %s176_s8 = sshll.u32 %s168_s7, 4  ;;  %p794_p0 = pnand %p472_p13, %p761_p4  ;;  %s177_s8 = int_to_ptr.vmem [resolvable:$true] %s176_s8 }
  0x18   : > { %p443_p1 = scmp.ge.s32.totalorder %s693_s17, 1  ;;  %p200_p2 = scmp.lt.s32.totalorder %s693_s17, 3 }
  0x19   : > { %s165_s10 = scalar_lea.sflag [#allocation3], %s785_s28  ;;  %p525_p3 = pneg %p794_p0 }
  0x1a   : > { %s536_s11 = scalar_lea.vmem %s177_s8, 128  ;;  %s695_s18 = smov [#allocation2]  }
  0x1b   : > { %p537_p5 = scmp.ne.s32.totalorder %s177_s8, %s536_s11  ;;  %s541_s19 = sshll.u32 %s695_s18, 4  ;;  %s542_s19 = int_to_ptr.vmem [resolvable:$false] %s541_s19 }
  0x1c   : > { %s543_s21 = scalar_lea.vmem %s542_s19, 256  ;;  %p544_p4 = scmp.lt.s32.totalorder %s177_s8, %s542_s19 }
  0x1d   : > { %p539_p6 = pnand %p537_p5, %p525_p3  ;;  %p545_p10 = scmp.lt.s32.totalorder %s543_s21, %s536_s11 }
  0x1f   : > { %p540_p7 = pneg %p539_p6  ;;  %p546_p13 = por %p545_p10, %p544_p4 }
  0x21   : > { %p547_p12 = pnand %p546_p13, %p540_p7 }
  0x23   : > { %550 = shalt.err (!%p547_p12)
}
  0x24   : > { %461 = dma.hbm_to_vmem [thread:$0]  (!%p794_p0), %s174_s6, 128, %s177_s8, %s165_s10  }
  0x25   : > { %p812_p5 = pnand %p443_p1, %p200_p2  ;;  %s193_s5 = scalar_lea.hbm %s936_s1, %s440_s30 }
  0x26   : > { %s187_s7 = scalar_lea.vmem [#allocation5], %s439_s29  ;;  %s184_s18 = scalar_lea.sflag [#allocation6], %s785_s28 }
  0x27   : > { %s195_s11 = sshll.u32 %s187_s7, 4  ;;  %s696_s6 = smov [#allocation5]   ;;  %s196_s11 = int_to_ptr.vmem [resolvable:$true] %s195_s11 }
  0x28   : > { %s564_s19 = scalar_lea.vmem %s196_s11, 128  ;;  %s569_s8 = sshll.u32 %s696_s6, 4  ;;  %s570_s8 = int_to_ptr.vmem [resolvable:$false] %s569_s8 }
  0x29   : > { %p565_p12 = scmp.ne.s32.totalorder %s196_s11, %s564_s19  ;;  %s571_s10 = scalar_lea.vmem %s570_s8, 256 }
  0x2a   : > { %p572_p1 = scmp.lt.s32.totalorder %s196_s11, %s570_s8  ;;  %p573_p2 = scmp.lt.s32.totalorder %s571_s10, %s564_s19 }
  0x2b   : > { %p567_p6 = pnand %p565_p12, %p525_p3 }
  0x2c   : > { %p574_p4 = por %p573_p2, %p572_p1 }
  0x2d   : > { %p568_p7 = pneg %p567_p6 }
  0x2f   : > { %p575_p10 = pnand %p574_p4, %p568_p7 }
  0x31   : > { %578 = shalt.err (!%p575_p10)
}
  0x32   : > { %464 = dma.hbm_to_vmem [thread:$0]  (!%p794_p0), %s193_s5, 128, %s196_s11, %s184_s18  }
  0x33   : > { %204 = sbr.rel (%p812_p5) target bundleno = 111 (0x6f), region = 28  ;;  %s828_s28 = sand.u32 (!%p812_p5), 1, %s677_s13  }
  0x34   : > { %s444_s29 = sshll.u32 (!%p812_p5), %s828_s28, 3  ;;  %s207_s30 = scalar_lea.sflag (!%p812_p5), [#allocation3], %s828_s28 }
  0x35   : > { %s210_s21 = scalar_lea.vmem (!%p812_p5), [#allocation2], %s444_s29 }
  0x38   : > { %656 = dma.done.wait (%p767_p8), %s207_s30, 128  }
  0x39   : > { %658 = vsyncadd (%p767_p8), %s207_s30, 4294967168  ;;  %s216_s9 = scalar_lea.sflag [#allocation6], %s828_s28  ;;  %s219_s23 = scalar_lea.vmem [#allocation5], %s444_s29 }
  0x3a   : > { %660 = dma.done.wait (%p767_p8), %s216_s9, 128  }
  0x3b   : > { %662 = vsyncadd (%p767_p8), %s216_s9, 4294967168  ;;  %s842_s22 = scalar_lea.vmem [#allocation7], %s828_s28  ;;  %v697_v0 = vmov 0.0   ;;  %s846_s4 = scalar_lea.vmem [#allocation8], %s828_s28  ;;  %v256_v1 = vld [vmem:[%s210_s21] sm:$0xff]  ;;  %v257_v2 = vld [vmem:[%s219_s23] sm:$0xff] }
  0x3c   : > { %254 = vst [vmem:[%s842_s22] sm:$0x1] %v697_v0  ;;  %255 = vst [vmem:[%s846_s4] sm:$0x1] %v697_v0  ;;  %v259_v3 = vmul.f32 %v257_v2, %v256_v1  ;;  %v269_v4 = vadd.f32 %v257_v2, %v256_v1  ;;  %s446_s24 = sshll.u32 %s685_s15, 4  ;;  %s295_s5 = sshll.u32 %s842_s22, 4  ;;  %s859_s5 = int_to_ptr.vmem [resolvable:$true] %s295_s5 }
  0x3d   : > { %s308_s7 = sshll.u32 %s846_s4, 4  ;;  %s857_s19 = scalar_lea.hbm %s937_s2, %s446_s24  ;;  %s866_s7 = int_to_ptr.vmem [resolvable:$true] %s308_s7 }
  0x3e   : > { %v260_v5 = vrot.slane %v259_v3, 4  ;;  %v270_v6 = vrot.slane %v269_v4, 4  ;;  %s864_s15 = scalar_lea.hbm %s938_s3, %s446_s24  ;;  %s279_s10 = scalar_lea.sflag [#allocation4], %s828_s28 }
  0x3f   : > { %s579_s29 = scalar_lea.vmem %s859_s5, 16  ;;  %s698_s30 = smov [#allocation7]  }
  0x40   : > { %v261_v7 = vadd.f32 %v260_v5, %v259_v3  ;;  %v271_v8 = vadd.f32 %v270_v6, %v269_v4  ;;  %p580_p8 = scmp.ne.s32.totalorder %s859_s5, %s579_s29  ;;  %s583_s21 = sshll.u32 %s698_s30, 4  ;;  %s584_s21 = int_to_ptr.vmem [resolvable:$false] %s583_s21 }
  0x41   : > { %s585_s9 = scalar_lea.vmem %s584_s21, 32  ;;  %p586_p13 = scmp.lt.s32.totalorder %s859_s5, %s584_s21 }
  0x42   : > { %v262_v9 = vrot.slane %v261_v7, 2  ;;  %v272_v10 = vrot.slane %v271_v8, 2  ;;  %p581_p0 = pnand %p580_p8, %p771_p9  ;;  %p587_p5 = scmp.lt.s32.totalorder %s585_s9, %s579_s29 }
  0x43   : > { %v258_v15 = vld [vmem:[%s842_s22] sm:$0x1] }
  0x44   : > { %v263_v11 = vadd.f32 %v262_v9, %v261_v7  ;;  %v273_v12 = vadd.f32 %v272_v10, %v271_v8  ;;  %v268_v16 = vld [vmem:[%s846_s4] sm:$0x1]  ;;  %p582_p3 = pneg %p581_p0  ;;  %p588_p12 = por %p587_p5, %p586_p13 }
  0x46   : > { %v264_v13 = vrot.slane %v263_v11, 1  ;;  %v274_v14 = vrot.slane %v273_v12, 1  ;;  %p589_p6 = pnand %p588_p12, %p582_p3 }
  0x48   : > { %v265_v17 = vadd.f32 %v264_v13, %v263_v11  ;;  %v275_v18 = vadd.f32 %v274_v14, %v273_v12 }
  0x4a   : > { %v266_v19 = vadd.f32 %v265_v17, %v258_v15  ;;  %v276_v20 = vadd.f32 %v275_v18, %v268_v16 }
  0x4c   : > { %267 = vst [vmem:[%s842_s22] sm:$0x1] %v266_v19  ;;  %277 = vst [vmem:[%s846_s4] sm:$0x1] %v276_v20 }
  0x4d   : > { %592 = shalt.err (!%p589_p6)
}
  0x4e   : > { %s593_s23 = scalar_lea.hbm %s857_s19, 16  ;;  %s597_s24 = scalar_lea.hbm %s937_s2, 32 }
  0x4f   : > { %p594_p7 = scmp.ne.s32.totalorder %s857_s19, %s593_s23  ;;  %p598_p4 = scmp.lt.s32.totalorder %s857_s19, %s937_s2 }
  0x50   : > { %p599_p10 = scmp.lt.s32.totalorder %s597_s24, %s593_s23 }
  0x51   : > { %p595_p1 = pnand %p594_p7, %p771_p9 }
  0x52   : > { %p600_p8 = por %p599_p10, %p598_p4 }
  0x53   : > { %p596_p2 = pneg %p595_p1 }
  0x55   : > { %p601_p0 = pnand %p600_p8, %p596_p2 }
  0x57   : > { %604 = shalt.err (!%p601_p0)
}
  0x58   : > { %454 = dma.vmem_to_hbm [thread:$0]  (%p771_p9), %s859_s5, 16, %s857_s19, %s279_s10  }
  0x59   : > { %s283_s6 = scalar_lea.sflag [#allocation9], %s828_s28  ;;  %s605_s8 = scalar_lea.vmem %s866_s7, 16 }
  0x5a   : > { %p606_p3 = scmp.ne.s32.totalorder %s866_s7, %s605_s8  ;;  %s699_s29 = smov [#allocation8]  }
  0x5b   : > { %s609_s30 = sshll.u32 %s699_s29, 4  ;;  %s610_s30 = int_to_ptr.vmem [resolvable:$false] %s609_s30 }
  0x5c   : > { %p607_p13 = pnand %p606_p3, %p771_p9  ;;  %s611_s21 = scalar_lea.vmem %s610_s30, 32 }
  0x5d   : > { %p612_p12 = scmp.lt.s32.totalorder %s866_s7, %s610_s30  ;;  %p613_p6 = scmp.lt.s32.totalorder %s611_s21, %s605_s8 }
  0x5e   : > { %p608_p5 = pneg %p607_p13 }
  0x5f   : > { %p614_p7 = por %p613_p6, %p612_p12 }
  0x61   : > { %p615_p1 = pnand %p614_p7, %p608_p5 }
  0x63   : > { %618 = shalt.err (!%p615_p1)
}
  0x64   : > { %s619_s5 = scalar_lea.hbm %s864_s15, 16  ;;  %s623_s10 = scalar_lea.hbm %s938_s3, 32 }
  0x65   : > { %p620_p2 = scmp.ne.s32.totalorder %s864_s15, %s619_s5  ;;  %p624_p8 = scmp.lt.s32.totalorder %s864_s15, %s938_s3 }
  0x66   : > { %p625_p0 = scmp.lt.s32.totalorder %s623_s10, %s619_s5 }
  0x67   : > { %p621_p4 = pnand %p620_p2, %p771_p9 }
  0x68   : > { %p626_p3 = por %p625_p0, %p624_p8 }
  0x69   : > { %p622_p10 = pneg %p621_p4 }
  0x6b   : > { %p627_p13 = pnand %p626_p3, %p622_p10 }
  0x6d   : > { %630 = shalt.err (!%p627_p13)
}
  0x6e   : > { %455 = dma.vmem_to_hbm [thread:$0]  (%p771_p9), %s866_s7, 16, %s864_s15, %s283_s6  }
  0x6f PF: > { %s320_s22 = sand.u32 1, %s673_s12   ;;  %p945_p5 = scmp.ge.s32.totalorder %s693_s17, 2 }
  0x70   : > { %s321_s4 = scalar_lea.sflag [#allocation4], %s320_s22 }
  0x71   : > { %p466_p12 = pnand %p945_p5, %p778_p11 }
  0x73   : > { %p467_p6 = pneg %p466_p12 }
  0x75   : > { %664 = dma.done.wait (%p467_p6), %s321_s4, 16  }
  0x76   : > { %666 = vsyncadd (%p467_p6), %s321_s4, 4294967280  ;;  %s329_s24 = scalar_lea.sflag [#allocation9], %s320_s22 }
  0x77   : > { %668 = dma.done.wait (%p467_p6), %s329_s24, 16  }
  0x78   : > { %670 = vsyncadd (%p467_p6), %s329_s24, 4294967280  ;;  %s26_s17 = sadd.s32 1, %s693_s17   ;;  %s946_s12 = smov %s677_s13 }
  0x79   : > { %p23_p7 = scmp.ge.s32.totalorder %s26_s17, 4   ;;  %s947_s13 = smov %s681_s14 }
  0x7a   : > { %s948_s14 = smov %s776_s26  ;;  %s949_s15 = smov %s689_s16 }
  0x7b   : > { %s950_s16 = smov %s952_s20  ;;  %25 = sbr.rel (!%p23_p7) target bundleno = 10 (0xa), region = 107 }
  0x80   :  { %333 = vsyncpa [#allocation3], 1 }
  0x81   :  { %335 = vsyncpa [#allocation3 + $0x1], 1 }
  0x82   :  { %336 = vsyncpa [#allocation6], 1 }
  0x83   :  { %338 = vsyncpa [#allocation6 + $0x1], 1 }
  0x84   :  { %339 = vsyncpa [#allocation4], 1 }
  0x85   :  { %341 = vsyncpa [#allocation4 + $0x1], 1 }
  0x86   :  { %342 = vsyncpa [#allocation9], 1 }
  0x87   :  { %344 = vsyncpa [#allocation9 + $0x1], 1 }

</bundles_post_ra>
